<compile_context>
chip_gen: v7x
topology: tpu7x:2x2x1
jax: 0.10.0
libtpu: 0.0.40
codegen_flags: <defaults>
</compile_context>

<pallas_src>
import functools

import jax
import jax.numpy as jnp
from jax.experimental import pallas as pl
from jax.experimental.pallas import tpu as pltpu


def _round_up(n, m):
    return ((n + m - 1) // m) * m


def _fused_mlp_kernel(x_ref,
                      w1_ref, b1_ref,
                      w2_ref, b2_ref,
                      w3_ref, b3_ref,
                      wc_ref, bc_ref,
                      logits_ref, h_ref,
                      *, apply_relu):
    """One batch-tile of the whole MLP. Everything stays in VMEM.

    x_ref:      (bm, Cin_p)   bf16
    w*_ref:     (K_p, N_p)    bf16   (zero padded)
    b*_ref:     (1, N_p)      f32    (zero padded)
    logits_ref: (bm, Cout_p)  f32
    h_ref:      (bm, 256)     f32    (padded 200-wide hidden)
    """

    def layer(a_bf16, w_ref, b_ref, relu):
        y = jnp.dot(a_bf16, w_ref[...], preferred_element_type=jnp.float32)
        y = y + b_ref[...]          # f32 bias add (broadcast over rows)
        if relu:
            y = jnp.maximum(y, 0.0)  # f32 elementwise (v5e has no bf16 VPU path)
        return y

    h1 = layer(x_ref[...], w1_ref, b1_ref, apply_relu)
    h2 = layer(h1.astype(jnp.bfloat16), w2_ref, b2_ref, apply_relu)
    h3 = layer(h2.astype(jnp.bfloat16), w3_ref, b3_ref, apply_relu)
    logits = layer(h3.astype(jnp.bfloat16), wc_ref, bc_ref, False)

    h_ref[...] = h3.astype(h_ref.dtype)
    logits_ref[...] = logits.astype(logits_ref.dtype)


def init_linear_params(key, in_features, out_features):
    """Deterministic init mimicking nn.Linear (uniform +/- 1/sqrt(fan_in)).
    Stored as (in, out) so forward is x @ W + b."""
    kw, kb = jax.random.split(key)
    bound = 1.0 / jnp.sqrt(jnp.float32(in_features))
    w = jax.random.uniform(kw, (in_features, out_features), jnp.float32, -bound, bound)
    b = jax.random.uniform(kb, (out_features,), jnp.float32, -bound, bound)
    return w, b


class MLPPallas:
    """Pallas implementation of the reference MLP (single fused kernel)."""

    _MAX_TILE_M = 256  # batch rows per block; multiple blocks -> parallel across TCs

    def __init__(self, in_channels, out_channels, activation=False, key=None):
        if key is None:
            key = jax.random.PRNGKey(0)
        keys = jax.random.split(key, 4)

        self.in_channels = in_channels
        self.out_channels = out_channels
        self.activation = activation

        dims = [(in_channels, 500), (500, 200), (200, 200), (200, out_channels)]
        params = [init_linear_params(k, i, o) for k, (i, o) in zip(keys, dims)]
        self.model_params = params[:3]           # unpadded f32 (for reference use)
        self.classifier_params = params[3]

        # Padded sizes (lane multiples of 128).
        self._cin_p = _round_up(max(in_channels, 128), 128)
        self._cout_p = _round_up(max(out_channels, 128), 128)
        padded_dims = [
            (self._cin_p, 512),     # in  -> 500
            (512, 256),             # 500 -> 200
            (256, 256),             # 200 -> 200
            (256, self._cout_p),    # 200 -> out
        ]

        # Pre-pad + cast weights (bf16) and biases (f32) ONCE.
        self._pw = []
        self._pb = []
        for (w, b), (ip, op) in zip(params, padded_dims):
            wp = jnp.zeros((ip, op), jnp.bfloat16).at[: w.shape[0], : w.shape[1]].set(
                w.astype(jnp.bfloat16))
            bp = jnp.zeros((1, op), jnp.float32).at[0, : b.shape[0]].set(b)
            self._pw.append(wp)
            self._pb.append(bp)

    def __call__(self, x):
        B = x.shape[0]

        # Choose batch tile: one block for small batches, 256-row blocks otherwise.
        b8 = _round_up(max(B, 8), 8)
        if b8 <= self._MAX_TILE_M:
            bm, Bp = b8, b8
        else:
            bm = self._MAX_TILE_M
            Bp = _round_up(b8, bm)

        xp = jnp.zeros((Bp, self._cin_p), jnp.bfloat16)
        xp = xp.at[:B, : self.in_channels].set(x.astype(jnp.bfloat16))

        kernel = functools.partial(_fused_mlp_kernel, apply_relu=self.activation)

        def full_spec(shape):
            return pl.BlockSpec(shape, lambda i: (0, 0))

        in_specs = [pl.BlockSpec((bm, self._cin_p), lambda i: (i, 0))]
        flat_params = []
        for wp, bp in zip(self._pw, self._pb):
            in_specs.append(full_spec(wp.shape))
            in_specs.append(full_spec(bp.shape))
            flat_params.extend((wp, bp))

        hp = 256  # padded width of the 200-wide hidden output
        cp = self._cout_p

        logits_p, h_p = pl.pallas_call(
            kernel,
            out_shape=(
                jax.ShapeDtypeStruct((Bp, cp), jnp.float32),
                jax.ShapeDtypeStruct((Bp, hp), jnp.float32),
            ),
            grid=(Bp // bm,),
            in_specs=in_specs,
            out_specs=(
                pl.BlockSpec((bm, cp), lambda i: (i, 0)),
                pl.BlockSpec((bm, hp), lambda i: (i, 0)),
            ),
            compiler_params=pltpu.CompilerParams(
                dimension_semantics=("parallel",)),
        )(xp, *flat_params)

        # Single slice at the very end (unpad batch + feature dims).
        logits = logits_p[:B, : self.out_channels]
        h = h_p[:B, :200]
        return logits, h


def _ref_forward(mlp, x):
    """Pure-JAX reference with the same numerics as the kernel:
    bf16 weights/activations into the matmul, f32 accumulation / bias / ReLU."""
    h = x.astype(jnp.float32)
    for (w, b) in mlp.model_params:
        h = jnp.dot(h.astype(jnp.bfloat16), w.astype(jnp.bfloat16),
                    preferred_element_type=jnp.float32) + b
        if mlp.activation:
            h = jnp.maximum(h, 0.0)
    wc, bc = mlp.classifier_params
    logits = jnp.dot(h.astype(jnp.bfloat16), wc.astype(jnp.bfloat16),
                     preferred_element_type=jnp.float32) + bc
    return logits, h


if __name__ == "__main__":
    in_channels = 32
    out_channels = 10
    batch = 2

    key = jax.random.PRNGKey(0)
    kx, kp, kx2 = jax.random.split(key, 3)
    x = jax.random.normal(kx, (batch, in_channels), jnp.float32)

    # activation=False (default of the reference module)
    mlp = MLPPallas(in_channels, out_channels, activation=False, key=kp)
    logits, h = mlp(x)
    jax.block_until_ready((logits, h))

    ref_logits, ref_h = _ref_forward(mlp, x)
    assert logits.shape == (batch, out_channels)
    assert h.shape == (batch, 200)
    assert jnp.allclose(logits, ref_logits, atol=1e-3, rtol=1e-3), "logits mismatch"
    assert jnp.allclose(h, ref_h, atol=1e-3, rtol=1e-3), "hidden mismatch"

    # activation=True path + multi-block batch grid (exercises the parallel axis).
    mlp_act = MLPPallas(in_channels, out_channels, activation=True, key=kp)
    x_big = jax.random.normal(kx2, (300, in_channels), jnp.float32)
    logits_b, h_b = mlp_act(x_big)
    jax.block_until_ready((logits_b, h_b))
    ref_logits_b, ref_h_b = _ref_forward(mlp_act, x_big)
    assert logits_b.shape == (300, out_channels)
    assert h_b.shape == (300, 200)
    assert jnp.allclose(logits_b, ref_logits_b, atol=1e-3, rtol=1e-3), "relu logits mismatch"
    assert jnp.allclose(h_b, ref_h_b, atol=1e-3, rtol=1e-3), "relu hidden mismatch"

    print("KERNEL_OK")
</pallas_src>

<mosaic_0001>
module attributes {stable_mosaic.version = 11 : i64} {
  func.func @_fused_mlp_kernel(%arg0: i32, %arg1: memref<8x128xbf16, #tpu.memory_space<vmem>>, %arg2: memref<128x512xbf16, #tpu.memory_space<vmem>>, %arg3: memref<1x512xf32, #tpu.memory_space<vmem>>, %arg4: memref<512x256xbf16, #tpu.memory_space<vmem>>, %arg5: memref<1x256xf32, #tpu.memory_space<vmem>>, %arg6: memref<256x256xbf16, #tpu.memory_space<vmem>>, %arg7: memref<1x256xf32, #tpu.memory_space<vmem>>, %arg8: memref<256x128xbf16, #tpu.memory_space<vmem>>, %arg9: memref<1x128xf32, #tpu.memory_space<vmem>>, %arg10: memref<8x128xf32, #tpu.memory_space<vmem>>, %arg11: memref<8x256xf32, #tpu.memory_space<vmem>>) attributes {dimension_semantics = [#tpu.dimension_semantics<parallel>], iteration_bounds = array<i64: 1>, scalar_prefetch = 0 : i64, scratch_operands = 0 : i64, tpu.core_type = #tpu.core_type<tc>, window_params = [{transform_indices = @transform_0, window_bounds = array<i64: 8, 128>}, {pipeline_mode = #tpu.pipeline_mode<synchronous>, transform_indices = @transform_1, window_bounds = array<i64: 128, 512>}, {pipeline_mode = #tpu.pipeline_mode<synchronous>, transform_indices = @transform_2, window_bounds = array<i64: 1, 512>}, {pipeline_mode = #tpu.pipeline_mode<synchronous>, transform_indices = @transform_3, window_bounds = array<i64: 512, 256>}, {pipeline_mode = #tpu.pipeline_mode<synchronous>, transform_indices = @transform_4, window_bounds = array<i64: 1, 256>}, {pipeline_mode = #tpu.pipeline_mode<synchronous>, transform_indices = @transform_5, window_bounds = array<i64: 256, 256>}, {pipeline_mode = #tpu.pipeline_mode<synchronous>, transform_indices = @transform_6, window_bounds = array<i64: 1, 256>}, {pipeline_mode = #tpu.pipeline_mode<synchronous>, transform_indices = @transform_7, window_bounds = array<i64: 256, 128>}, {pipeline_mode = #tpu.pipeline_mode<synchronous>, transform_indices = @transform_8, window_bounds = array<i64: 1, 128>}, {transform_indices = @transform_9, window_bounds = array<i64: 8, 128>}, {transform_indices = @transform_10, window_bounds = array<i64: 8, 256>}]} {
    %c0 = arith.constant 0 : index
    %c0_0 = arith.constant 0 : index
    %0 = vector.load %arg1[%c0, %c0_0] : memref<8x128xbf16, #tpu.memory_space<vmem>>, vector<8x128xbf16>
    %c0_1 = arith.constant 0 : index
    %c0_2 = arith.constant 0 : index
    %1 = vector.load %arg2[%c0_1, %c0_2] : memref<128x512xbf16, #tpu.memory_space<vmem>>, vector<128x512xbf16>
    %cst = arith.constant dense<0.000000e+00> : vector<8x512xf32>
    %2 = tpu.matmul %0, %1, %cst {dimension_numbers = #tpu.dot_dimension_numbers<[1], [0], [0], [1], [0, 0, 1, 1], [], []>} : vector<8x128xbf16>, vector<128x512xbf16>, vector<8x512xf32> -> vector<8x512xf32>
    %c0_3 = arith.constant 0 : index
    %c0_4 = arith.constant 0 : index
    %3 = vector.load %arg3[%c0_3, %c0_4] : memref<1x512xf32, #tpu.memory_space<vmem>>, vector<1x512xf32>
    %4 = vector.broadcast %3 : vector<1x512xf32> to vector<8x512xf32>
    %5 = arith.addf %2, %4 : vector<8x512xf32>
    %6 = arith.truncf %5 : vector<8x512xf32> to vector<8x512xbf16>
    %c0_5 = arith.constant 0 : index
    %c0_6 = arith.constant 0 : index
    %7 = vector.load %arg4[%c0_5, %c0_6] : memref<512x256xbf16, #tpu.memory_space<vmem>>, vector<512x256xbf16>
    %cst_7 = arith.constant dense<0.000000e+00> : vector<8x256xf32>
    %8 = tpu.matmul %6, %7, %cst_7 {dimension_numbers = #tpu.dot_dimension_numbers<[1], [0], [0], [1], [0, 0, 1, 1], [], []>} : vector<8x512xbf16>, vector<512x256xbf16>, vector<8x256xf32> -> vector<8x256xf32>
    %c0_8 = arith.constant 0 : index
    %c0_9 = arith.constant 0 : index
    %9 = vector.load %arg5[%c0_8, %c0_9] : memref<1x256xf32, #tpu.memory_space<vmem>>, vector<1x256xf32>
    %10 = vector.broadcast %9 : vector<1x256xf32> to vector<8x256xf32>
    %11 = arith.addf %8, %10 : vector<8x256xf32>
    %12 = arith.truncf %11 : vector<8x256xf32> to vector<8x256xbf16>
    %c0_10 = arith.constant 0 : index
    %c0_11 = arith.constant 0 : index
    %13 = vector.load %arg6[%c0_10, %c0_11] : memref<256x256xbf16, #tpu.memory_space<vmem>>, vector<256x256xbf16>
    %cst_12 = arith.constant dense<0.000000e+00> : vector<8x256xf32>
    %14 = tpu.matmul %12, %13, %cst_12 {dimension_numbers = #tpu.dot_dimension_numbers<[1], [0], [0], [1], [0, 0, 1, 1], [], []>} : vector<8x256xbf16>, vector<256x256xbf16>, vector<8x256xf32> -> vector<8x256xf32>
    %c0_13 = arith.constant 0 : index
    %c0_14 = arith.constant 0 : index
    %15 = vector.load %arg7[%c0_13, %c0_14] : memref<1x256xf32, #tpu.memory_space<vmem>>, vector<1x256xf32>
    %16 = vector.broadcast %15 : vector<1x256xf32> to vector<8x256xf32>
    %17 = arith.addf %14, %16 : vector<8x256xf32>
    %18 = arith.truncf %17 : vector<8x256xf32> to vector<8x256xbf16>
    %c0_15 = arith.constant 0 : index
    %c0_16 = arith.constant 0 : index
    %19 = vector.load %arg8[%c0_15, %c0_16] : memref<256x128xbf16, #tpu.memory_space<vmem>>, vector<256x128xbf16>
    %cst_17 = arith.constant dense<0.000000e+00> : vector<8x128xf32>
    %20 = tpu.matmul %18, %19, %cst_17 {dimension_numbers = #tpu.dot_dimension_numbers<[1], [0], [0], [1], [0, 0, 1, 1], [], []>} : vector<8x256xbf16>, vector<256x128xbf16>, vector<8x128xf32> -> vector<8x128xf32>
    %c0_18 = arith.constant 0 : index
    %c0_19 = arith.constant 0 : index
    %21 = vector.load %arg9[%c0_18, %c0_19] : memref<1x128xf32, #tpu.memory_space<vmem>>, vector<1x128xf32>
    %22 = vector.broadcast %21 : vector<1x128xf32> to vector<8x128xf32>
    %23 = arith.addf %20, %22 : vector<8x128xf32>
    %c0_20 = arith.constant 0 : index
    %c0_21 = arith.constant 0 : index
    %24 = vector.load %arg11[%c0_20, %c0_21] : memref<8x256xf32, #tpu.memory_space<vmem>>, vector<8x256xf32>
    tpu.vector_store %arg11[%c0_20, %c0_21], %17 {strides = array<i32>} : memref<8x256xf32, #tpu.memory_space<vmem>>, vector<8x256xf32>,
    %c0_22 = arith.constant 0 : index
    %c0_23 = arith.constant 0 : index
    %25 = vector.load %arg10[%c0_22, %c0_23] : memref<8x128xf32, #tpu.memory_space<vmem>>, vector<8x128xf32>
    tpu.vector_store %arg10[%c0_22, %c0_23], %23 {strides = array<i32>} : memref<8x128xf32, #tpu.memory_space<vmem>>, vector<8x128xf32>,
    return
  }
  func.func @transform_0(%arg0: i32) -> (i32, i32) {
    %c0_i32 = arith.constant 0 : i32
    %c0_i32_0 = arith.constant 0 : i32
    return %arg0, %c0_i32 : i32, i32
  }
  func.func @transform_1(%arg0: i32) -> (i32, i32) {
    %c0_i32 = arith.constant 0 : i32
    %c0_i32_0 = arith.constant 0 : i32
    %c0_i32_1 = arith.constant 0 : i32
    return %c0_i32, %c0_i32_0 : i32, i32
  }
  func.func @transform_2(%arg0: i32) -> (i32, i32) {
    %c0_i32 = arith.constant 0 : i32
    %c0_i32_0 = arith.constant 0 : i32
    %c0_i32_1 = arith.constant 0 : i32
    return %c0_i32, %c0_i32_0 : i32, i32
  }
  func.func @transform_3(%arg0: i32) -> (i32, i32) {
    %c0_i32 = arith.constant 0 : i32
    %c0_i32_0 = arith.constant 0 : i32
    %c0_i32_1 = arith.constant 0 : i32
    return %c0_i32, %c0_i32_0 : i32, i32
  }
  func.func @transform_4(%arg0: i32) -> (i32, i32) {
    %c0_i32 = arith.constant 0 : i32
    %c0_i32_0 = arith.constant 0 : i32
    %c0_i32_1 = arith.constant 0 : i32
    return %c0_i32, %c0_i32_0 : i32, i32
  }
  func.func @transform_5(%arg0: i32) -> (i32, i32) {
    %c0_i32 = arith.constant 0 : i32
    %c0_i32_0 = arith.constant 0 : i32
    %c0_i32_1 = arith.constant 0 : i32
    return %c0_i32, %c0_i32_0 : i32, i32
  }
  func.func @transform_6(%arg0: i32) -> (i32, i32) {
    %c0_i32 = arith.constant 0 : i32
    %c0_i32_0 = arith.constant 0 : i32
    %c0_i32_1 = arith.constant 0 : i32
    return %c0_i32, %c0_i32_0 : i32, i32
  }
  func.func @transform_7(%arg0: i32) -> (i32, i32) {
    %c0_i32 = arith.constant 0 : i32
    %c0_i32_0 = arith.constant 0 : i32
    %c0_i32_1 = arith.constant 0 : i32
    return %c0_i32, %c0_i32_0 : i32, i32
  }
  func.func @transform_8(%arg0: i32) -> (i32, i32) {
    %c0_i32 = arith.constant 0 : i32
    %c0_i32_0 = arith.constant 0 : i32
    %c0_i32_1 = arith.constant 0 : i32
    return %c0_i32, %c0_i32_0 : i32, i32
  }
  func.func @transform_9(%arg0: i32) -> (i32, i32) {
    %c0_i32 = arith.constant 0 : i32
    %c0_i32_0 = arith.constant 0 : i32
    return %arg0, %c0_i32 : i32, i32
  }
  func.func @transform_10(%arg0: i32) -> (i32, i32) {
    %c0_i32 = arith.constant 0 : i32
    %c0_i32_0 = arith.constant 0 : i32
    return %arg0, %c0_i32 : i32, i32
  }
}

</mosaic_0001>

<bundles_post_ra>
// kernel: tpu_custom_call.1
= control target key start
LH: loop header
LB: loop body
LE: loop exit
PB: predicated region body
PF: predicated region fallthrough
CT: control target
= control target key end

     0   :  { %16 = vsyncpa [#allocation3], 0  ;;  %s2095_s0 = inlined_call_operand.hbm [shape: bf16[8,128], index: 0, kind: input, shape index: {}]   ;;  %s2096_s1 = inlined_call_operand.hbm [shape: bf16[128,512], index: 1, kind: input, shape index: {}]   ;;  %s2097_s2 = inlined_call_operand.vmem [shape: f32[1,512], index: 2, kind: input, shape index: {}]   ;;  %s2098_s3 = inlined_call_operand.hbm [shape: bf16[512,256], index: 3, kind: input, shape index: {}]   ;;  %s2099_s4 = inlined_call_operand.vmem [shape: f32[1,256], index: 4, kind: input, shape index: {}]   ;;  %s2100_s5 = inlined_call_operand.hbm [shape: bf16[256,256], index: 5, kind: input, shape index: {}]   ;;  %s2101_s6 = inlined_call_operand.vmem [shape: f32[1,256], index: 6, kind: input, shape index: {}]   ;;  %s2102_s7 = inlined_call_operand.hbm [shape: bf16[256,128], index: 7, kind: input, shape index: {}]   ;;  %s2103_s8 = inlined_call_operand.vmem [shape: f32[1,128], index: 8, kind: input, shape index: {}]   ;;  %s2104_s9 = inlined_call_operand.hbm [shape: f32[8,128], index: 9, kind: output, shape index: {0}]   ;;  %s2105_s10 = inlined_call_operand.hbm [shape: f32[8,256], index: 10, kind: output, shape index: {1}]  }
   0x1   :  { %17 = vsyncpa [#allocation6], 0 }
   0x2   :  { %18 = vsyncpa [#allocation9], 0 }
   0x3   :  { %19 = vsyncpa [#allocation4], 0 }
   0x4   :  { %20 = vsyncpa [#allocation13], 0  ;;  %s1899_s13 = smov [#allocation5]   ;;  %s1735_s17 = scalar_lea.hbm %s2096_s1, 4096 }
   0x5   :  { %s36_s14 = sshll.u32 %s1899_s13, 4  ;;  %p1736_p0 = scmp.ne.s32.totalorder %s2096_s1, %s1735_s17  ;;  %s37_s14 = int_to_ptr.vmem [resolvable:$true] %s36_s14 }
   0x6   :  { %p1739_p1 = scmp.lt.u32.totalorder %s1735_s17, %s2096_s1 }
   0x8   :  { %p1741_p2 = pnand %p1739_p1, %p1736_p0 }
   0xa   :  { %1744 = shalt.err (!%p1741_p2)
}
   0xb   :  { %s1745_s22 = scalar_lea.vmem %s37_s14, 4096  ;;  %p1750_p4 = scmp.lt.s32.totalorder %s37_s14, %s37_s14 }
   0xc   :  { %p1746_p3 = scmp.ne.s32.totalorder %s37_s14, %s1745_s22  ;;  %p1751_p5 = scmp.lt.s32.totalorder %s1745_s22, %s1745_s22 }
   0xe   :  { %p1752_p6 = por %p1751_p5, %p1750_p4 }
  0x10   :  { %p1753_p7 = pnand %p1752_p6, %p1746_p3 }
  0x12   :  { %1756 = shalt.err (!%p1753_p7)
}
  0x13   :  { %s1900_s23 = smov 256   ;;  %s1901_s24 = smov 16  }
  0x14   :  { %42 = dma.hbm_to_vmem [thread:$0]  %s2096_s1, 4096, %s37_s14, [#allocation6], %s1900_s23, %s1900_s23, %s1901_s24  }
  0x15   :  { %s1902_s27 = smov [#allocation8]   ;;  %s1903_s29 = smov [#allocation2]  }
  0x16   :  { %s64_s28 = sshll.u32 %s1902_s27, 4  ;;  %s27_s30 = sshll.u32 %s1903_s29, 4  ;;  %s65_s28 = int_to_ptr.vmem [resolvable:$true] %s64_s28  ;;  %s28_s30 = int_to_ptr.vmem [resolvable:$true] %s27_s30 }
  0x17   :  { %s1757_s13 = scalar_lea.hbm %s2100_s5, 4096 }
  0x18   :  { %p1758_p8 = scmp.ne.s32.totalorder %s2100_s5, %s1757_s13  ;;  %p1761_p9 = scmp.lt.u32.totalorder %s1757_s13, %s2100_s5 }
  0x1a   :  { %p1763_p10 = pnand %p1761_p9, %p1758_p8 }
  0x1c   :  { %1766 = shalt.err (!%p1763_p10)
}
  0x1d   :  { %s1767_s1 = scalar_lea.vmem %s65_s28, 4096  ;;  %p1772_p12 = scmp.lt.s32.totalorder %s65_s28, %s65_s28 }
  0x1e   :  { %p1768_p11 = scmp.ne.s32.totalorder %s65_s28, %s1767_s1  ;;  %p1773_p13 = scmp.lt.s32.totalorder %s1767_s1, %s1767_s1 }
  0x20   :  { %p1774_p0 = por %p1773_p13, %p1772_p12 }
  0x22   :  { %p1775_p1 = pnand %p1774_p0, %p1768_p11 }
  0x24   :  { %1778 = shalt.err (!%p1775_p1)
}
  0x25   :  { %s1904_s14 = smov 128   ;;  %s1905_s19 = smov 8  }
  0x26   :  { %70 = dma.hbm_to_vmem [thread:$0]  %s2100_s5, 4096, %s65_s28, [#allocation9], %s1904_s14, %s1904_s14, %s1905_s19  }
  0x27   :  { %s1779_s24 = scalar_lea.hbm %s2095_s0, 64 }
  0x28   :  { %p1780_p2 = scmp.ne.s32.totalorder %s2095_s0, %s1779_s24  ;;  %p1783_p3 = scmp.lt.u32.totalorder %s1779_s24, %s2095_s0 }
  0x2a   :  { %p1785_p4 = pnand %p1783_p3, %p1780_p2 }
  0x2c   :  { %1788 = shalt.err (!%p1785_p4)
}
  0x2d   :  { %s1789_s11 = scalar_lea.vmem %s28_s30, 64  ;;  %p1794_p6 = scmp.lt.s32.totalorder %s28_s30, %s28_s30 }
  0x2e   :  { %p1790_p5 = scmp.ne.s32.totalorder %s28_s30, %s1789_s11  ;;  %p1795_p7 = scmp.lt.s32.totalorder %s1789_s11, %s1789_s11 }
  0x30   :  { %p1796_p8 = por %p1795_p7, %p1794_p6 }
  0x32   :  { %p1797_p9 = pnand %p1796_p8, %p1790_p5 }
  0x34   :  { %1800 = shalt.err (!%p1797_p9)
}
  0x35   :  { %30 = dma.hbm_to_vmem [thread:$0]  %s2095_s0, 64, %s28_s30, [#allocation3]  }
  0x36   :  { %s1906_s12 = smov [#allocation7]   ;;  %s1907_s15 = smov [#allocation10]  }
  0x37   :  { %s50_s13 = sshll.u32 %s1906_s12, 4  ;;  %s78_s16 = sshll.u32 %s1907_s15, 4  ;;  %s51_s13 = int_to_ptr.vmem [resolvable:$true] %s50_s13  ;;  %s79_s16 = int_to_ptr.vmem [resolvable:$true] %s78_s16 }
  0x38   :  { %s1801_s1 = scalar_lea.hbm %s2098_s3, 8192 }
  0x39   :  { %p1802_p10 = scmp.ne.s32.totalorder %s2098_s3, %s1801_s1  ;;  %p1805_p11 = scmp.lt.u32.totalorder %s1801_s1, %s2098_s3 }
  0x3b   :  { %p1807_p12 = pnand %p1805_p11, %p1802_p10 }
  0x3d   :  { %1810 = shalt.err (!%p1807_p12)
}
  0x3e   :  { %s1811_s0 = scalar_lea.vmem %s51_s13, 8192  ;;  %p1816_p0 = scmp.lt.s32.totalorder %s51_s13, %s51_s13 }
  0x3f   :  { %p1812_p13 = scmp.ne.s32.totalorder %s51_s13, %s1811_s0  ;;  %p1817_p1 = scmp.lt.s32.totalorder %s1811_s0, %s1811_s0 }
  0x41   :  { %p1818_p2 = por %p1817_p1, %p1816_p0 }
  0x43   :  { %p1819_p3 = pnand %p1818_p2, %p1812_p13 }
  0x45   :  { %1822 = shalt.err (!%p1819_p3)
}
  0x46   :  { %56 = dma.hbm_to_vmem [thread:$0]  %s2098_s3, 8192, %s51_s13, [#allocation6], %s1904_s14, %s1904_s14, %s1905_s19  }
  0x47   :  { %s1823_s27 = scalar_lea.hbm %s2102_s7, 2048 }
  0x48   :  { %p1824_p4 = scmp.ne.s32.totalorder %s2102_s7, %s1823_s27  ;;  %p1827_p5 = scmp.lt.u32.totalorder %s1823_s27, %s2102_s7 }
  0x4a   :  { %p1829_p6 = pnand %p1827_p5, %p1824_p4 }
  0x4c   :  { %1832 = shalt.err (!%p1829_p6)
}
  0x4d   :  { %s1833_s12 = scalar_lea.vmem %s79_s16, 2048  ;;  %p1838_p8 = scmp.lt.s32.totalorder %s79_s16, %s79_s16 }
  0x4e   :  { %p1834_p7 = scmp.ne.s32.totalorder %s79_s16, %s1833_s12  ;;  %p1839_p9 = scmp.lt.s32.totalorder %s1833_s12, %s1833_s12 }
  0x50   :  { %p1840_p10 = por %p1839_p9, %p1838_p8 }
  0x52   :  { %p1841_p11 = pnand %p1840_p10, %p1834_p7 }
  0x54   :  { %1844 = shalt.err (!%p1841_p11)
}
  0x55   :  { %s1908_s3 = smov 64   ;;  %s1909_s14 = smov 4  }
  0x56   :  { %84 = dma.hbm_to_vmem [thread:$0]  %s2102_s7, 2048, %s79_s16, [#allocation9], %s1908_s3, %s1908_s3, %s1909_s14  }
  0x57   :  { %1889 = dma.done.wait [#allocation3], 64  }
  0x58   :  { %1890 = vsyncadd [#allocation3], 4294967232 }
  0x59   :  { %1891 = dma.done.wait [#allocation6], 12288  }
  0x5a   :  { %1892 = vsyncadd [#allocation6], 4294955008 }
  0x5b   :  { %1893 = dma.done.wait [#allocation9], 6144  }
  0x5c   :  { %1894 = vsyncadd [#allocation9], 4294961152  ;;  %v1910_v0 = vmov 0   ;;  %v1527_v1 = vld [vmem:[#allocation5 + $0x4] ss:$16 sps:$4 sm:$0xff]   ;;  %s1911_s18 = smov [#allocation12]  }
  0x5d   :  { %350 = vmatprep.mubr.bf16.mxu0 %v1910_v0  ;;  %391 = vmatprep.mubr.bf16.mxu1 %v1910_v0  ;;  %v1529_v2 = vld [vmem:[#allocation5] ss:$16 sps:$4 sm:$0xff]   ;;  %v1530_v3 = vld [vmem:[#allocation5 + $0x24] ss:$16 sps:$4 sm:$0xff]   ;;  %v1551_v10 = vld [vmem:[#allocation5 + $0xc] ss:$16 sps:$4 sm:$0xff]  }
  0x5e   :  { %318 = vmatprep.subr.bf16.mxu0 %v1527_v1  ;;  %v1532_v4 = vld [vmem:[#allocation5 + $0x20] ss:$16 sps:$4 sm:$0xff]   ;;  %v1533_v5 = vld [vmem:[#allocation5 + $0x44] ss:$16 sps:$4 sm:$0xff]   ;;  %v1553_v11 = vld [vmem:[#allocation5 + $0x8] ss:$16 sps:$4 sm:$0xff]   ;;  %359 = vmatprep.subr.bf16.mxu1 %v1551_v10 }
  0x5f   :  { %319 = vmatpush1.bf16.msra.mxu0 %v1529_v2  ;;  %v1535_v6 = vld [vmem:[#allocation5 + $0x40] ss:$16 sps:$4 sm:$0xff]   ;;  %v1536_v7 = vld [vmem:[#allocation5 + $0x64] ss:$16 sps:$4 sm:$0xff]   ;;  %v1554_v12 = vld [vmem:[#allocation5 + $0x2c] ss:$16 sps:$4 sm:$0xff]   ;;  %360 = vmatpush1.bf16.msra.mxu1 %v1553_v11 }
  0x60   :  { %320 = vmatprep.subr.bf16.mxu0 %v1530_v3  ;;  %v1538_v8 = vld [vmem:[#allocation5 + $0x60] ss:$16 sps:$4 sm:$0xff]   ;;  %v1539_v9 = vld [vmem:[#allocation5 + $0x84] ss:$16 sps:$4 sm:$0xff]   ;;  %v1556_v14 = vld [vmem:[#allocation5 + $0x28] ss:$16 sps:$4 sm:$0xff]   ;;  %361 = vmatprep.subr.bf16.mxu1 %v1554_v12 }
  0x61   :  { %v1541_v13 = vld [vmem:[#allocation5 + $0x80] ss:$16 sps:$4 sm:$0xff]   ;;  %v1557_v15 = vld [vmem:[#allocation5 + $0x4c] ss:$16 sps:$4 sm:$0xff]   ;;  %v1542_v16 = vld [vmem:[#allocation5 + $0xa4] ss:$16 sps:$4 sm:$0xff]  }
  0x62   :  { %v1544_v17 = vld [vmem:[#allocation5 + $0xa0] ss:$16 sps:$4 sm:$0xff]   ;;  %v1559_v18 = vld [vmem:[#allocation5 + $0x48] ss:$16 sps:$4 sm:$0xff]   ;;  %v1560_v19 = vld [vmem:[#allocation5 + $0x6c] ss:$16 sps:$4 sm:$0xff]  }
  0x63   :  { %321 = vmatpush1.bf16.msra.mxu0 %v1532_v4  ;;  %362 = vmatpush1.bf16.msra.mxu1 %v1556_v14  ;;  %v1545_v20 = vld [vmem:[#allocation5 + $0xc4] ss:$16 sps:$4 sm:$0xff]   ;;  %v1547_v21 = vld [vmem:[#allocation5 + $0xc0] ss:$16 sps:$4 sm:$0xff]   ;;  %v1562_v22 = vld [vmem:[#allocation5 + $0x68] ss:$16 sps:$4 sm:$0xff]  }
  0x64   :  { %322 = vmatprep.subr.bf16.mxu0 %v1533_v5  ;;  %363 = vmatprep.subr.bf16.mxu1 %v1557_v15  ;;  %v1563_v23 = vld [vmem:[#allocation5 + $0x8c] ss:$16 sps:$4 sm:$0xff]   ;;  %v1548_v24 = vld [vmem:[#allocation5 + $0xe4] ss:$16 sps:$4 sm:$0xff]   ;;  %v1550_v25 = vld [vmem:[#allocation5 + $0xe0] ss:$16 sps:$4 sm:$0xff]  }
  0x65   :  { %v1565_v26 = vld [vmem:[#allocation5 + $0x88] ss:$16 sps:$4 sm:$0xff]   ;;  %v1566_v27 = vld [vmem:[#allocation5 + $0xac] ss:$16 sps:$4 sm:$0xff]   ;;  %s1325_s1 = sshll.u32 %s1911_s18, 4  ;;  %s1326_s1 = int_to_ptr.vmem [resolvable:$true] %s1325_s1 }
  0x66   :  { %v1577_v28 = vld [vmem:[#allocation7 + $0x4] ss:$8 sps:$4 sm:$0xff]   ;;  %v103_v29 = vld [vmem:[#allocation2] sm:$0xf]  ;;  %v1568_v30 = vld [vmem:[#allocation5 + $0xa8] ss:$16 sps:$4 sm:$0xff]   ;;  %p1850_p13 = scmp.lt.s32.totalorder %s1326_s1, %s1326_s1 }
  0x67   :  { %323 = vmatpush1.bf16.msra.mxu0 %v1535_v6  ;;  %364 = vmatpush1.bf16.msra.mxu1 %v1559_v18  ;;  %v1569_v31 = vld [vmem:[#allocation5 + $0xcc] ss:$16 sps:$4 sm:$0xff]   ;;  %v1575_v32 = vld [vmem:[#allocation7] ss:$8 sps:$4 sm:$0xff]   ;;  %v1578_v36 = vld [vmem:[#allocation7 + $0x10] ss:$8 sps:$4 sm:$0xff]  }
  0x68   :  { %324 = vmatprep.subr.bf16.mxu0 %v1536_v7  ;;  %365 = vmatprep.subr.bf16.mxu1 %v1560_v19  ;;  %v1580_v33 = vld [vmem:[#allocation7 + $0x14] ss:$8 sps:$4 sm:$0xff]   ;;  %v1571_v34 = vld [vmem:[#allocation5 + $0xc8] ss:$16 sps:$4 sm:$0xff]   ;;  %v1583_v37 = vld [vmem:[#allocation7 + $0x24] ss:$8 sps:$4 sm:$0xff]  }
  0x69   :  { %v1572_v35 = vld [vmem:[#allocation5 + $0xec] ss:$16 sps:$4 sm:$0xff]   ;;  %v1574_v38 = vld [vmem:[#allocation5 + $0xe8] ss:$16 sps:$4 sm:$0xff]  }
  0x6a   :  { %v1581_v39 = vld [vmem:[#allocation7 + $0x20] ss:$8 sps:$4 sm:$0xff]   ;;  %v1586_v40 = vld [vmem:[#allocation7 + $0x34] ss:$8 sps:$4 sm:$0xff]   ;;  %v1584_v41 = vld [vmem:[#allocation7 + $0x30] ss:$8 sps:$4 sm:$0xff]  }
  0x6b   :  { %325 = vmatpush1.bf16.msra.mxu0 %v1538_v8  ;;  %366 = vmatpush1.bf16.msra.mxu1 %v1562_v22  ;;  %v1589_v42 = vld [vmem:[#allocation7 + $0x44] ss:$8 sps:$4 sm:$0xff]   ;;  %v1587_v43 = vld [vmem:[#allocation7 + $0x40] ss:$8 sps:$4 sm:$0xff]   ;;  %v1592_v44 = vld [vmem:[#allocation7 + $0x54] ss:$8 sps:$4 sm:$0xff]  }
  0x6c   :  { %326 = vmatprep.subr.bf16.mxu0 %v1539_v9  ;;  %367 = vmatprep.subr.bf16.mxu1 %v1563_v23  ;;  %v1590_v45 = vld [vmem:[#allocation7 + $0x50] ss:$8 sps:$4 sm:$0xff]   ;;  %v1595_v46 = vld [vmem:[#allocation7 + $0x64] ss:$8 sps:$4 sm:$0xff]   ;;  %v1593_v47 = vld [vmem:[#allocation7 + $0x60] ss:$8 sps:$4 sm:$0xff]  }
  0x6d   :  { %v1598_v48 = vld [vmem:[#allocation7 + $0x74] ss:$8 sps:$4 sm:$0xff]   ;;  %v1596_v49 = vld [vmem:[#allocation7 + $0x70] ss:$8 sps:$4 sm:$0xff]   ;;  %v1601_v50 = vld [vmem:[#allocation7 + $0x84] ss:$8 sps:$4 sm:$0xff]  }
  0x6e   :  { %v1599_v51 = vld [vmem:[#allocation7 + $0x80] ss:$8 sps:$4 sm:$0xff]   ;;  %v1604_v52 = vld [vmem:[#allocation7 + $0x94] ss:$8 sps:$4 sm:$0xff]   ;;  %v1602_v53 = vld [vmem:[#allocation7 + $0x90] ss:$8 sps:$4 sm:$0xff]  }
  0x6f   :  { %327 = vmatpush1.bf16.msra.mxu0 %v1541_v13  ;;  %368 = vmatpush1.bf16.msra.mxu1 %v1565_v26  ;;  %v1607_v54 = vld [vmem:[#allocation7 + $0xa4] ss:$8 sps:$4 sm:$0xff]   ;;  %v1605_v55 = vld [vmem:[#allocation7 + $0xa0] ss:$8 sps:$4 sm:$0xff]   ;;  %v1610_v56 = vld [vmem:[#allocation7 + $0xb4] ss:$8 sps:$4 sm:$0xff]   ;;  %v138_v26 = vlaneseq }
  0x70   :  { %328 = vmatprep.subr.bf16.mxu0 %v1542_v16  ;;  %369 = vmatprep.subr.bf16.mxu1 %v1566_v27  ;;  %v1608_v57 = vld [vmem:[#allocation7 + $0xb0] ss:$8 sps:$4 sm:$0xff]   ;;  %v1613_v58 = vld [vmem:[#allocation7 + $0xc4] ss:$8 sps:$4 sm:$0xff]   ;;  %v1611_v59 = vld [vmem:[#allocation7 + $0xc0] ss:$8 sps:$4 sm:$0xff]  }
  0x71   :  { %v1616_v60 = vld [vmem:[#allocation7 + $0xd4] ss:$8 sps:$4 sm:$0xff]   ;;  %v1614_v61 = vld [vmem:[#allocation7 + $0xd0] ss:$8 sps:$4 sm:$0xff]   ;;  %v1619_v62 = vld [vmem:[#allocation7 + $0xe4] ss:$8 sps:$4 sm:$0xff]  }
  0x72   :  { %v1617_v63 = vld [vmem:[#allocation7 + $0xe0] ss:$8 sps:$4 sm:$0xff]   ;;  %v1622_v0 = vld [vmem:[#allocation7 + $0xf4] ss:$8 sps:$4 sm:$0xff]   ;;  %v1620_v1 = vld [vmem:[#allocation7 + $0xf0] ss:$8 sps:$4 sm:$0xff]  }
  0x73   :  { %329 = vmatpush1.bf16.msra.mxu0 %v1544_v17  ;;  %370 = vmatpush1.bf16.msra.mxu1 %v1568_v30  ;;  %v1625_v2 = vld [vmem:[#allocation7 + $0x104] ss:$8 sps:$4 sm:$0xff]   ;;  %v1671_v3 = vld [vmem:[#allocation8] ss:$8 sps:$4 sm:$0xff]   ;;  %v1676_v5 = vld [vmem:[#allocation8 + $0x14] ss:$8 sps:$4 sm:$0xff]  }
  0x74   :  { %330 = vmatprep.subr.bf16.mxu0 %v1545_v20  ;;  %371 = vmatprep.subr.bf16.mxu1 %v1569_v31  ;;  %v1673_v4 = vld [vmem:[#allocation8 + $0x4] ss:$8 sps:$4 sm:$0xff]   ;;  %v1674_v6 = vld [vmem:[#allocation8 + $0x10] ss:$8 sps:$4 sm:$0xff]   ;;  %v1677_v8 = vld [vmem:[#allocation8 + $0x20] ss:$8 sps:$4 sm:$0xff]  }
  0x75   :  { %v1679_v7 = vld [vmem:[#allocation8 + $0x24] ss:$8 sps:$4 sm:$0xff]   ;;  %v1682_v9 = vld [vmem:[#allocation8 + $0x34] ss:$8 sps:$4 sm:$0xff]   ;;  %v1680_v10 = vld [vmem:[#allocation8 + $0x30] ss:$8 sps:$4 sm:$0xff]  }
  0x76   :  { %v1685_v11 = vld [vmem:[#allocation8 + $0x44] ss:$8 sps:$4 sm:$0xff]   ;;  %v1683_v12 = vld [vmem:[#allocation8 + $0x40] ss:$8 sps:$4 sm:$0xff]   ;;  %v1688_v13 = vld [vmem:[#allocation8 + $0x54] ss:$8 sps:$4 sm:$0xff]  }
  0x77   :  { %331 = vmatpush1.bf16.msra.mxu0 %v1547_v21  ;;  %372 = vmatpush1.bf16.msra.mxu1 %v1571_v34  ;;  %v1686_v14 = vld [vmem:[#allocation8 + $0x50] ss:$8 sps:$4 sm:$0xff]   ;;  %v1691_v15 = vld [vmem:[#allocation8 + $0x64] ss:$8 sps:$4 sm:$0xff]   ;;  %v1689_v16 = vld [vmem:[#allocation8 + $0x60] ss:$8 sps:$4 sm:$0xff]  }
  0x78   :  { %332 = vmatprep.subr.bf16.mxu0 %v1548_v24  ;;  %373 = vmatprep.subr.bf16.mxu1 %v1572_v35  ;;  %v1694_v17 = vld [vmem:[#allocation8 + $0x74] ss:$8 sps:$4 sm:$0xff]   ;;  %v1692_v18 = vld [vmem:[#allocation8 + $0x70] ss:$8 sps:$4 sm:$0xff]   ;;  %v1697_v19 = vld [vmem:[#allocation8 + $0x84] ss:$8 sps:$4 sm:$0xff]  }
  0x79   :  { %v1695_v20 = vld [vmem:[#allocation8 + $0x80] ss:$8 sps:$4 sm:$0xff]   ;;  %v1700_v21 = vld [vmem:[#allocation8 + $0x94] ss:$8 sps:$4 sm:$0xff]   ;;  %v1698_v22 = vld [vmem:[#allocation8 + $0x90] ss:$8 sps:$4 sm:$0xff]  }
  0x7a   :  { %v1703_v23 = vld [vmem:[#allocation8 + $0xa4] ss:$8 sps:$4 sm:$0xff]   ;;  %v1701_v24 = vld [vmem:[#allocation8 + $0xa0] ss:$8 sps:$4 sm:$0xff]   ;;  %v1704_v27 = vld [vmem:[#allocation8 + $0xb0] ss:$8 sps:$4 sm:$0xff]  }
  0x7b   :  { %333 = vmatpush1.bf16.msra.mxu0 %v1550_v25  ;;  %374 = vmatpush1.bf16.msra.mxu1 %v1574_v38  ;;  %v1706_v25 = vld [vmem:[#allocation8 + $0xb4] ss:$8 sps:$4 sm:$0xff]   ;;  %v1707_v30 = vld [vmem:[#allocation8 + $0xc0] ss:$8 sps:$4 sm:$0xff]   ;;  %v1710_v35 = vld [vmem:[#allocation8 + $0xd0] ss:$8 sps:$4 sm:$0xff]  }
  0x7c   :  { %800 = vmatprep.subr.bf16.mxu0 %v1577_v28  ;;  %1088 = vmatprep.subr.bf16.mxu1 %v1673_v4  ;;  %v1709_v28 = vld [vmem:[#allocation8 + $0xc4] ss:$8 sps:$4 sm:$0xff]   ;;  %v1712_v31 = vld [vmem:[#allocation8 + $0xd4] ss:$8 sps:$4 sm:$0xff]   ;;  %v1641_v4 = vld [vmem:[#allocation7 + $0x160] ss:$8 sps:$4 sm:$0xff]  }
  0x7e   :  { %351 = vmatmul.mubr.bf16.vlgmr.msra.gmra.mrb[0].mxu0 %v103_v29  ;;  %392 = vmatmul.mubr.bf16.vlgmr.msra.gmra.mrb[0].mxu1 %v103_v29  ;;  %v2034_v29 = vshrl.u32 %v138_v26, 7 }
  0x7f   :  { %801 = vmatpush1.bf16.msra.mxu0 %v1575_v32  ;;  %1089 = vmatpush1.bf16.msra.mxu1 %v1671_v3  ;;  %v1643_v3 = vld [vmem:[#allocation7 + $0x164] ss:$8 sps:$4 sm:$0xff]  }
  0x80   :  { %802 = vmatprep.subr.bf16.mxu0 %v1580_v33  ;;  %1090 = vmatprep.subr.bf16.mxu1 %v1676_v5  ;;  %v2037_v32 = vsub.s32 0, %v2034_v29  ;;  %v2042_v33 = vld [vmem:[%s2097_s2] sm:$0xf]  ;;  %v2045_v34 = vsub.s32 1, %v2034_v29 }
  0x81   :  { %v1646_v5 = vld [vmem:[#allocation7 + $0x174] ss:$8 sps:$4 sm:$0xff]  }
  0x82   :  { %v145_v38 = vrot.slane %v2042_v33, %v2045_v34 }
  0x83   :  { %803 = vmatpush1.bf16.msra.mxu0 %v1578_v36  ;;  %1091 = vmatpush1.bf16.msra.mxu1 %v1674_v6  ;;  %v1715_v36 = vld [vmem:[#allocation8 + $0xe4] ss:$8 sps:$4 sm:$0xff]   ;;  %v1644_v6 = vld [vmem:[#allocation7 + $0x170] ss:$8 sps:$4 sm:$0xff]  }
  0x84   :  { %804 = vmatprep.subr.bf16.mxu0 %v1583_v37  ;;  %1092 = vmatprep.subr.bf16.mxu1 %v1679_v7  ;;  %v141_v37 = vrot.slane %v2042_v33, %v2037_v32  ;;  %v1649_v7 = vld [vmem:[#allocation7 + $0x184] ss:$8 sps:$4 sm:$0xff]  }
  0x87   :  { %805 = vmatpush1.bf16.msra.mxu0 %v1581_v39  ;;  %1093 = vmatpush1.bf16.msra.mxu1 %v1677_v8  ;;  %v1713_v39 = vld [vmem:[#allocation8 + $0xe0] ss:$8 sps:$4 sm:$0xff]  }
  0x88   :  { %806 = vmatprep.subr.bf16.mxu0 %v1586_v40  ;;  %1094 = vmatprep.subr.bf16.mxu1 %v1682_v9  ;;  %v1647_v8 = vld [vmem:[#allocation7 + $0x180] ss:$8 sps:$4 sm:$0xff]   ;;  %v1652_v9 = vld [vmem:[#allocation7 + $0x194] ss:$8 sps:$4 sm:$0xff]  }
  0x8b   :  { %807 = vmatpush1.bf16.msra.mxu0 %v1584_v41  ;;  %1095 = vmatpush1.bf16.msra.mxu1 %v1680_v10  ;;  %v1650_v10 = vld [vmem:[#allocation7 + $0x190] ss:$8 sps:$4 sm:$0xff]  }
  0x8c   :  { %808 = vmatprep.subr.bf16.mxu0 %v1589_v42  ;;  %1096 = vmatprep.subr.bf16.mxu1 %v1685_v11  ;;  %v1655_v11 = vld [vmem:[#allocation7 + $0x1a4] ss:$8 sps:$4 sm:$0xff]  }
  0x8f   :  { %809 = vmatpush1.bf16.msra.mxu0 %v1587_v43  ;;  %1097 = vmatpush1.bf16.msra.mxu1 %v1683_v12  ;;  %v1653_v12 = vld [vmem:[#allocation7 + $0x1a0] ss:$8 sps:$4 sm:$0xff]  }
  0x90   :  { %810 = vmatprep.subr.bf16.mxu0 %v1592_v44  ;;  %1098 = vmatprep.subr.bf16.mxu1 %v1688_v13  ;;  %v1658_v13 = vld [vmem:[#allocation7 + $0x1b4] ss:$8 sps:$4 sm:$0xff]  }
  0x93   :  { %811 = vmatpush1.bf16.msra.mxu0 %v1590_v45  ;;  %1099 = vmatpush1.bf16.msra.mxu1 %v1686_v14  ;;  %v1656_v14 = vld [vmem:[#allocation7 + $0x1b0] ss:$8 sps:$4 sm:$0xff]  }
  0x94   :  { %812 = vmatprep.subr.bf16.mxu0 %v1595_v46  ;;  %1100 = vmatprep.subr.bf16.mxu1 %v1691_v15  ;;  %v1661_v15 = vld [vmem:[#allocation7 + $0x1c4] ss:$8 sps:$4 sm:$0xff]  }
  0x97   :  { %813 = vmatpush1.bf16.msra.mxu0 %v1593_v47  ;;  %1101 = vmatpush1.bf16.msra.mxu1 %v1689_v16  ;;  %v1623_v47 = vld [vmem:[#allocation7 + $0x100] ss:$8 sps:$4 sm:$0xff]  }
  0x98   :  { %814 = vmatprep.subr.bf16.mxu0 %v1598_v48  ;;  %1102 = vmatprep.subr.bf16.mxu1 %v1694_v17  ;;  %v1659_v16 = vld [vmem:[#allocation7 + $0x1c0] ss:$8 sps:$4 sm:$0xff]   ;;  %v1664_v17 = vld [vmem:[#allocation7 + $0x1d4] ss:$8 sps:$4 sm:$0xff]  }
  0x9b   :  { %815 = vmatpush1.bf16.msra.mxu0 %v1596_v49  ;;  %1103 = vmatpush1.bf16.msra.mxu1 %v1692_v18  ;;  %v1628_v49 = vld [vmem:[#allocation7 + $0x114] ss:$8 sps:$4 sm:$0xff]   ;;  %v1662_v18 = vld [vmem:[#allocation7 + $0x1d0] ss:$8 sps:$4 sm:$0xff]  }
  0x9c   :  { %816 = vmatprep.subr.bf16.mxu0 %v1601_v50  ;;  %1104 = vmatprep.subr.bf16.mxu1 %v1697_v19  ;;  %v152_v50 = vsub.s32 3, %v2034_v29  ;;  %v148_v19 = vsub.s32 2, %v2034_v29  ;;  %v1719_v29 = vld [vmem:[#allocation10 + $0x40] sm:$0xff]  }
  0x9f   :  { %817 = vmatpush1.bf16.msra.mxu0 %v1599_v51  ;;  %1105 = vmatpush1.bf16.msra.mxu1 %v1695_v20  ;;  %v1626_v51 = vld [vmem:[#allocation7 + $0x110] ss:$8 sps:$4 sm:$0xff]   ;;  %v1667_v20 = vld [vmem:[#allocation7 + $0x1e4] ss:$8 sps:$4 sm:$0xff]  }
  0xa0   :  { %818 = vmatprep.subr.bf16.mxu0 %v1604_v52  ;;  %1106 = vmatprep.subr.bf16.mxu1 %v1700_v21  ;;  %v1631_v52 = vld [vmem:[#allocation7 + $0x124] ss:$8 sps:$4 sm:$0xff]   ;;  %v1665_v21 = vld [vmem:[#allocation7 + $0x1e0] ss:$8 sps:$4 sm:$0xff]  }
  0xa3   :  { %819 = vmatpush1.bf16.msra.mxu0 %v1602_v53  ;;  %1107 = vmatpush1.bf16.msra.mxu1 %v1698_v22  ;;  %v153_v53 = vrot.slane %v2042_v33, %v152_v50  ;;  %v149_v22 = vrot.slane %v2042_v33, %v148_v19  ;;  %v1727_v50 = vld [vmem:[#allocation10 + $0x60] sm:$0xff]  }
  0xa4   :  { %820 = vmatprep.subr.bf16.mxu0 %v1607_v54  ;;  %1108 = vmatprep.subr.bf16.mxu1 %v1703_v23  ;;  %v1670_v23 = vld [vmem:[#allocation7 + $0x1f4] ss:$8 sps:$4 sm:$0xff]  }
  0xa7   :  { %821 = vmatpush1.bf16.msra.mxu0 %v1605_v55  ;;  %1109 = vmatpush1.bf16.msra.mxu1 %v1701_v24  ;;  %v1629_v55 = vld [vmem:[#allocation7 + $0x120] ss:$8 sps:$4 sm:$0xff]   ;;  %v1668_v24 = vld [vmem:[#allocation7 + $0x1f0] ss:$8 sps:$4 sm:$0xff]  }
  0xa8   :  { %822 = vmatprep.subr.bf16.mxu0 %v1610_v56  ;;  %1110 = vmatprep.subr.bf16.mxu1 %v1706_v25 }
  0xab   :  { %823 = vmatpush1.bf16.msra.mxu0 %v1608_v57  ;;  %1111 = vmatpush1.bf16.msra.mxu1 %v1704_v27  ;;  %v1634_v57 = vld [vmem:[#allocation7 + $0x134] ss:$8 sps:$4 sm:$0xff]  }
  0xac   :  { %824 = vmatprep.subr.bf16.mxu0 %v1613_v58  ;;  %1112 = vmatprep.subr.bf16.mxu1 %v1709_v28  ;;  %v1718_v27 = vld [vmem:[#allocation8 + $0xf4] ss:$8 sps:$4 sm:$0xff]   ;;  %v1716_v28 = vld [vmem:[#allocation8 + $0xf0] ss:$8 sps:$4 sm:$0xff]  }
  0xaf   :  { %825 = vmatpush1.bf16.msra.mxu0 %v1611_v59  ;;  %1113 = vmatpush1.bf16.msra.mxu1 %v1707_v30  ;;  %v468_v30 = vld [vmem:[%s2099_s4] sm:$0x3] }
  0xb0   :  { %826 = vmatprep.subr.bf16.mxu0 %v1616_v60  ;;  %1114 = vmatprep.subr.bf16.mxu1 %v1712_v31  ;;  %v473_v31 = vrot.slane %v468_v30, %v2037_v32  ;;  %v477_v33 = vrot.slane %v468_v30, %v2045_v34 }
  0xb3   :  { %827 = vmatpush1.bf16.msra.mxu0 %v1614_v61  ;;  %1115 = vmatpush1.bf16.msra.mxu1 %v1710_v35 }
  0xb4   :  { %828 = vmatprep.subr.bf16.mxu0 %v1619_v62  ;;  %1116 = vmatprep.subr.bf16.mxu1 %v1715_v36  ;;  %v1632_v62 = vld [vmem:[#allocation7 + $0x130] ss:$8 sps:$4 sm:$0xff]  }
  0xb7   :  { %829 = vmatpush1.bf16.msra.mxu0 %v1617_v63  ;;  %1117 = vmatpush1.bf16.msra.mxu1 %v1713_v39  ;;  %v1637_v63 = vld [vmem:[#allocation7 + $0x144] ss:$8 sps:$4 sm:$0xff]  }
  0xb8   :  { %830 = vmatprep.subr.bf16.mxu0 %v1622_v0  ;;  %v1635_v0 = vld [vmem:[#allocation7 + $0x140] ss:$8 sps:$4 sm:$0xff]   ;;  %1118 = vmatprep.subr.bf16.mxu1 %v1718_v27 }
  0xbb   :  { %831 = vmatpush1.bf16.msra.mxu0 %v1620_v1  ;;  %v1640_v1 = vld [vmem:[#allocation7 + $0x154] ss:$8 sps:$4 sm:$0xff]   ;;  %1119 = vmatpush1.bf16.msra.mxu1 %v1716_v28 }
  0xbc   :  { %841 = vmatprep.subr.bf16.mxu0 %v1625_v2  ;;  %v1638_v2 = vld [vmem:[#allocation7 + $0x150] ss:$8 sps:$4 sm:$0xff]   ;;  %1485 = vmatprep.subr.bf16.mxu1 %v1719_v29 }
 0x151   :  { %v352_v40 = vpop.f32.mrb[0].mxu0  ;;  %v2053_v54 = vpop.f32.mrb[0].mxu1 }
 0x152   :  { %v353_v41 = vadd.f32 %v352_v40, %v141_v37  ;;  %v354_v42 = vpop.f32.mrb[1].mxu0  ;;  %v395_v56 = vpop.f32.mrb[1].mxu1  ;;  %v394_v25 = vadd.f32 %v2053_v54, %v149_v22  ;;  %v1731_v54 = vld [vmem:[#allocation10 + $0x70] sm:$0xff]  }
 0x153   :  { %v355_v43 = vadd.f32 %v354_v42, %v145_v38  ;;  %v356_v44 = vpop.f32.mrb[2].mxu0  ;;  %v396_v58 = vadd.f32 %v395_v56, %v153_v53  ;;  %v397_v59 = vpop.f32.mrb[2].mxu1  ;;  %v1720_v42 = vld [vmem:[#allocation10] sm:$0xff]   ;;  %v1730_v53 = vld [vmem:[#allocation10 + $0x28] sm:$0xff]   ;;  %v1733_v56 = vld [vmem:[#allocation10 + $0x78] sm:$0xff]  }
 0x154   :  { %v357_v45 = vpop.f32.mrb[3].mxu0  ;;  %v400_v48 = vpack.c.bf16 %v353_v41, %v353_v41  ;;  %v398_v60 = vpop.f32.mrb[3].mxu1  ;;  %v402_v26 = vpack.c.bf16 %v394_v25, %v394_v25  ;;  %v1721_v44 = vld [vmem:[#allocation10 + $0x48] sm:$0xff]  }
 0x155   :  { %v401_v46 = vpack.c.bf16 %v355_v43, %v355_v43  ;;  %v403_v61 = vpack.c.bf16 %v396_v58, %v396_v58  ;;  %v1722_v45 = vld [vmem:[#allocation10 + $0x8] sm:$0xff]   ;;  %v916_v58 = vld [vmem:[%s2101_s6] sm:$0x3]  ;;  %s1845_s6 = scalar_lea.vmem %s1326_s1, 256 }
 0x156   :  { %v921_v59 = vrot.slane %v916_v58, %v2037_v32  ;;  %v925_v60 = vrot.slane %v916_v58, %v2045_v34  ;;  %p1846_p12 = scmp.ne.s32.totalorder %s1326_s1, %s1845_s6  ;;  %p1851_p0 = scmp.lt.s32.totalorder %s1845_s6, %s1845_s6 }
 0x157   :  { %832 = vmatprep.mubr.bf16.mxu0 %v401_v46  ;;  %v1723_v46 = vld [vmem:[#allocation10 + $0x50] sm:$0xff]  }
 0x158   :  { %833 = vmatmul.mubr.bf16.vlgmr.msra.gmra.mrb[4].mxu0 %v400_v48  ;;  %v1725_v48 = vld [vmem:[#allocation10 + $0x58] sm:$0xff]   ;;  %p1852_p1 = por %p1851_p0, %p1850_p13 }
 0x159   :  { %842 = vmatpush1.bf16.msra.mxu0 %v1623_v47  ;;  %873 = vmatprep.mubr.bf16.mxu0 %v403_v61  ;;  %v1724_v47 = vld [vmem:[#allocation10 + $0x10] sm:$0xff]  }
 0x15a   :  { %843 = vmatprep.subr.bf16.mxu0 %v1628_v49  ;;  %v1726_v49 = vld [vmem:[#allocation10 + $0x18] sm:$0xff]   ;;  %p1853_p2 = pnand %p1852_p1, %p1846_p12 }
 0x15d   :  { %844 = vmatpush1.bf16.msra.mxu0 %v1626_v51  ;;  %v1728_v51 = vld [vmem:[#allocation10 + $0x20] sm:$0xff]  }
 0x15e   :  { %845 = vmatprep.subr.bf16.mxu0 %v1631_v52  ;;  %v1729_v52 = vld [vmem:[#allocation10 + $0x68] sm:$0xff]  }
 0x161   :  { %846 = vmatpush1.bf16.msra.mxu0 %v1629_v55  ;;  %v1732_v55 = vld [vmem:[#allocation10 + $0x30] sm:$0xff]  }
 0x162   :  { %847 = vmatprep.subr.bf16.mxu0 %v1634_v57  ;;  %v1734_v57 = vld [vmem:[#allocation10 + $0x38] sm:$0xff]  }
 0x165   :  { %848 = vmatpush1.bf16.msra.mxu0 %v1632_v62 }
 0x166   :  { %849 = vmatprep.subr.bf16.mxu0 %v1637_v63 }
 0x169   :  { %850 = vmatpush1.bf16.msra.mxu0 %v1635_v0 }
 0x16a   :  { %851 = vmatprep.subr.bf16.mxu0 %v1640_v1 }
 0x16d   :  { %852 = vmatpush1.bf16.msra.mxu0 %v1638_v2 }
 0x16e   :  { %853 = vmatprep.subr.bf16.mxu0 %v1643_v3 }
 0x171   :  { %854 = vmatpush1.bf16.msra.mxu0 %v1641_v4 }
 0x172   :  { %855 = vmatprep.subr.bf16.mxu0 %v1646_v5 }
 0x175   :  { %856 = vmatpush1.bf16.msra.mxu0 %v1644_v6 }
 0x176   :  { %857 = vmatprep.subr.bf16.mxu0 %v1649_v7 }
 0x179   :  { %858 = vmatpush1.bf16.msra.mxu0 %v1647_v8 }
 0x17a   :  { %859 = vmatprep.subr.bf16.mxu0 %v1652_v9 }
 0x17d   :  { %860 = vmatpush1.bf16.msra.mxu0 %v1650_v10 }
 0x17e   :  { %861 = vmatprep.subr.bf16.mxu0 %v1655_v11 }
 0x181   :  { %862 = vmatpush1.bf16.msra.mxu0 %v1653_v12 }
 0x182   :  { %863 = vmatprep.subr.bf16.mxu0 %v1658_v13 }
 0x185   :  { %864 = vmatpush1.bf16.msra.mxu0 %v1656_v14 }
 0x186   :  { %865 = vmatprep.subr.bf16.mxu0 %v1661_v15 }
 0x189   :  { %866 = vmatpush1.bf16.msra.mxu0 %v1659_v16 }
 0x18a   :  { %867 = vmatprep.subr.bf16.mxu0 %v1664_v17 }
 0x18d   :  { %868 = vmatpush1.bf16.msra.mxu0 %v1662_v18 }
 0x18e   :  { %869 = vmatprep.subr.bf16.mxu0 %v1667_v20 }
 0x191   :  { %870 = vmatpush1.bf16.msra.mxu0 %v1665_v21 }
 0x192   :  { %871 = vmatprep.subr.bf16.mxu0 %v1670_v23 }
 0x195   :  { %872 = vmatpush1.bf16.msra.mxu0 %v1668_v24 }
 0x198   :  { %874 = vmatmul.mubr.bf16.vlgmr.msra.gmra.mrb[4].mxu0 %v402_v26 }
 0x26b   :  { %v875_v35 = vpop.f32.mrb[4].mxu0 }
 0x26c   :  { %v1507_v36 = vadd.f32 %v875_v35, %v473_v31  ;;  %v877_v37 = vpop.f32.mrb[5].mxu0 }
 0x26d   :  { %v1508_v38 = vadd.f32 %v877_v37, %v477_v33  ;;  %v879_v39 = vpop.f32.mrb[6].mxu0 }
 0x26e   :  { %v880_v40 = vpop.f32.mrb[7].mxu0  ;;  %v882_v43 = vpack.c.bf16 %v1507_v36, %v1507_v36 }
 0x26f   :  { %v883_v41 = vpack.c.bf16 %v1508_v38, %v1508_v38 }
 0x271   :  { %1120 = vmatprep.mubr.bf16.mxu1 %v883_v41 }
 0x272   :  { %1121 = vmatmul.mubr.bf16.vlgmr.msra.gmra.mrb[4].mxu1 %v882_v43 }
 0x273   :  { %1486 = vmatpush3.bf16.msra.mxu1 %v1720_v42 }
 0x274   :  { %1487 = vmatprep.subr.bf16.mxu1 %v1721_v44 }
 0x277   :  { %1488 = vmatpush3.bf16.msra.mxu1 %v1722_v45 }
 0x278   :  { %1489 = vmatprep.subr.bf16.mxu1 %v1723_v46 }
 0x27b   :  { %1490 = vmatpush3.bf16.msra.mxu1 %v1724_v47 }
 0x27c   :  { %1491 = vmatprep.subr.bf16.mxu1 %v1725_v48 }
 0x27f   :  { %1492 = vmatpush3.bf16.msra.mxu1 %v1726_v49 }
 0x280   :  { %1493 = vmatprep.subr.bf16.mxu1 %v1727_v50 }
 0x283   :  { %1494 = vmatpush3.bf16.msra.mxu1 %v1728_v51 }
 0x284   :  { %1495 = vmatprep.subr.bf16.mxu1 %v1729_v52 }
 0x287   :  { %1496 = vmatpush3.bf16.msra.mxu1 %v1730_v53 }
 0x288   :  { %1497 = vmatprep.subr.bf16.mxu1 %v1731_v54 }
 0x28b   :  { %1498 = vmatpush3.bf16.msra.mxu1 %v1732_v55 }
 0x28c   :  { %1499 = vmatprep.subr.bf16.mxu1 %v1733_v56 }
 0x28f   :  { %1500 = vmatpush3.bf16.msra.mxu1 %v1734_v57 }
 0x345   :  { %v1122_v61 = vpop.f32.mrb[4].mxu1 }
 0x346   :  { %v1123_v62 = vadd.f32 %v1122_v61, %v921_v59  ;;  %v1124_v63 = vpop.f32.mrb[5].mxu1 }
 0x347   :  { %v1125_v0 = vadd.f32 %v1124_v63, %v925_v60  ;;  %v1126_v1 = vpop.f32.mrb[6].mxu1 }
 0x348   :  { %1306 = vst [vmem:[#allocation12] sm:$0xff] %v1123_v62  ;;  %v1127_v2 = vpop.f32.mrb[7].mxu1  ;;  %v1129_v4 = vpack.c.bf16 %v1123_v62, %v1123_v62 }
 0x349   :  { %v1130_v3 = vpack.c.bf16 %v1125_v0, %v1125_v0  ;;  %1307 = vst [vmem:[#allocation12 + $0x8] sm:$0xff] %v1125_v0 }
 0x34b   :  { %1298 = vmatprep.mubr.bf16.mxu1 %v1130_v3 }
 0x34c   :  { %1299 = vmatmul.mubr.bf16.vlgmr.msra.gmra.mrb[8].mxu1 %v1129_v4 }
 0x34d   :  { %1856 = shalt.err (!%p1853_p2)
}
 0x34e   :  { %s1857_s22 = scalar_lea.hbm %s2105_s10, 256 }
 0x34f   :  { %p1858_p3 = scmp.ne.s32.totalorder %s2105_s10, %s1857_s22  ;;  %p1861_p4 = scmp.lt.u32.totalorder %s1857_s22, %s2105_s10 }
 0x351   :  { %p1863_p5 = pnand %p1861_p4, %p1858_p3 }
 0x353   :  { %1866 = shalt.err (!%p1863_p5)
}
 0x354   :  { %1328 = dma.vmem_to_hbm [thread:$0]  %s1326_s1, 256, %s2105_s10, [#allocation13]   ;;  %v1468_v34 = vld [vmem:[%s2103_s8] ss:$0 sm:$0xff] }
 0x355   :  { %s1912_s11 = smov [#allocation11]  }
 0x356   :  { %s1315_s5 = sshll.u32 %s1912_s11, 4  ;;  %s1316_s5 = int_to_ptr.vmem [resolvable:$true] %s1315_s5 }
 0x357   :  { %s1867_s28 = scalar_lea.vmem %s1316_s5, 128  ;;  %p1872_p7 = scmp.lt.s32.totalorder %s1316_s5, %s1316_s5 }
 0x358   :  { %p1868_p6 = scmp.ne.s32.totalorder %s1316_s5, %s1867_s28  ;;  %p1873_p8 = scmp.lt.s32.totalorder %s1867_s28, %s1867_s28 }
 0x35a   :  { %p1874_p9 = por %p1873_p8, %p1872_p7 }
 0x35c   :  { %p1875_p10 = pnand %p1874_p9, %p1868_p6 }
 0x41f   :  { %v1501_v32 = vpop.f32.mrb[8].mxu1 }
 0x420   :  { %v1502_v5 = vpop.f32.mrb[9].mxu1 }
 0x421   :  { %v1503_v6 = vadd.f32 %v1502_v5, %v1501_v32  ;;  %v1504_v7 = vpop.f32.mrb[10].mxu1 }
 0x422   :  { %v1505_v8 = vpop.f32.mrb[11].mxu1 }
 0x423   :  { %v1301_v9 = vadd.f32 %v1503_v6, %v1468_v34 }
 0x425   :  { %1308 = vst [vmem:[#allocation11] sm:$0xff] %v1301_v9 }
 0x426   :  { %1878 = shalt.err (!%p1875_p10)
}
 0x427   :  { %s1879_s8 = scalar_lea.hbm %s2104_s9, 128 }
 0x428   :  { %p1880_p11 = scmp.ne.s32.totalorder %s2104_s9, %s1879_s8  ;;  %p1883_p12 = scmp.lt.u32.totalorder %s1879_s8, %s2104_s9 }
 0x42a   :  { %p1885_p13 = pnand %p1883_p12, %p1880_p11 }
 0x42c   :  { %1888 = shalt.err (!%p1885_p13)
}
 0x42d   :  { %1318 = dma.vmem_to_hbm [thread:$0]  %s1316_s5, 128, %s2104_s9, [#allocation4]  }
 0x42e   :  { %1895 = dma.done.wait [#allocation4], 128  }
 0x42f   :  { %1896 = vsyncadd [#allocation4], 4294967168 }
 0x430   :  { %1897 = dma.done.wait [#allocation13], 256  }
 0x431   :  { %1898 = vsyncadd [#allocation13], 4294967040 }
 0x432   :  { %1335 = vsyncpa [#allocation3], 1 }
 0x433   :  { %1336 = vsyncpa [#allocation6], 1 }
 0x434   :  { %1337 = vsyncpa [#allocation9], 1 }
 0x435   :  { %1338 = vsyncpa [#allocation4], 1 }
 0x436   :  { %1339 = vsyncpa [#allocation13], 1 }

</bundles_post_ra>
